<compile_context>
chip_gen: v6e
topology: v6e:2x2x1
jax: 0.10.0
libtpu: 0.0.40
codegen_flags: <defaults>
</compile_context>

<pallas_src>
import jax
import jax.numpy as jnp
from jax import lax
from jax.experimental import pallas as pl
from jax.experimental.pallas import tpu as pltpu


def _make_gather_kernel(token_tile: int, nsem: int):
    """Build a kernel that gathers `token_tile` table rows per grid step."""

    def kernel(ids_ref, table_ref, out_ref, sems):
        # ids_ref : SMEM int32[T_pad]       (scalar prefetch)
        # table_ref: HBM  f32[V+U+I, D]     (memory_space=pl.ANY)
        # out_ref : VMEM f32[token_tile, D] (current output block)
        base = pl.program_id(0) * token_tile

        def copy(r):
            row = ids_ref[base + r]
            return pltpu.make_async_copy(
                table_ref.at[pl.ds(row, 1), :],
                out_ref.at[pl.ds(r, 1), :],
                sems.at[r % nsem],
            )

        # Issue row DMAs with at most `nsem` in flight; semaphore slot
        # r % nsem is reused only after its previous copy has completed.
        def issue(r, carry):
            @pl.when(r >= nsem)
            def _():
                copy(r - nsem).wait()

            copy(r).start()
            return carry

        lax.fori_loop(0, token_tile, issue, 0)

        # Drain the last min(nsem, token_tile) outstanding copies.
        n_drain = min(nsem, token_tile)

        def drain(r, carry):
            copy(r).wait()
            return carry

        lax.fori_loop(token_tile - n_drain, token_tile, drain, 0)

    return kernel


def gpt4rec_embed(input_ids, wte, user_emb, item_emb, *, token_tile=128,
                  max_inflight_dma=16):
    """Pallas implementation of GPT4RecommendationBaseModel.embed()."""
    B, S = input_ids.shape
    V, D = wte.shape
    U = user_emb.shape[0]
    I = item_emb.shape[0]
    N = V + U + I

    # Single concatenated table: rows [0,V)=wte, [V,V+U)=user, [V+U,N)=item.
    table = jnp.concatenate([wte, user_emb, item_emb], axis=0)

    # Raw ids already index the concatenated space.  Clipping to [0, N-1]
    # reproduces the PyTorch masked-clamp semantics exactly
    # (negative -> wte[0], >= N -> item_emb[-1]).
    T = B * S
    ids = jnp.clip(input_ids.reshape(T).astype(jnp.int32), 0, N - 1)

    # Pad the token axis to a multiple of the tile (padding rows gather
    # table[0]; they are sliced away below).
    T_pad = ((T + token_tile - 1) // token_tile) * token_tile
    ids = jnp.pad(ids, (0, T_pad - T))

    nsem = min(max_inflight_dma, token_tile)
    kernel = _make_gather_kernel(token_tile, nsem)

    grid_spec = pltpu.PrefetchScalarGridSpec(
        num_scalar_prefetch=1,                        # ids -> SMEM
        grid=(T_pad // token_tile,),
        in_specs=[pl.BlockSpec(memory_space=pl.ANY)],  # table stays in HBM
        out_specs=pl.BlockSpec((token_tile, D), lambda t, ids_smem: (t, 0)),
        scratch_shapes=[pltpu.SemaphoreType.DMA((nsem,))],
    )

    itemsize = jnp.dtype(table.dtype).itemsize
    bytes_accessed = T_pad * D * itemsize * 2 + T_pad * 4  # gather + store + ids

    out = pl.pallas_call(
        kernel,
        out_shape=jax.ShapeDtypeStruct((T_pad, D), table.dtype),
        grid_spec=grid_spec,
        compiler_params=pltpu.CompilerParams(
            dimension_semantics=("parallel",),
            vmem_limit_bytes=32 * 1024 * 1024,
        ),
        cost_estimate=pl.CostEstimate(
            flops=0, transcendentals=0, bytes_accessed=int(bytes_accessed)),
    )(ids, table)

    return out[:T].reshape(B, S, D)


def gpt4rec_forward(input_ids, wte, user_emb, item_emb):
    input_embeddings = gpt4rec_embed(input_ids, wte, user_emb, item_emb)
    # TODO(synk): gpt2model(inputs_embeds=input_embeddings) transformer stack
    # is not translated; return the embeddings that would feed it.
    return input_embeddings


def _reference_embed(input_ids, wte, user_emb, item_emb):
    """Pure-JAX transcription of the PyTorch embed() for validation."""
    V, U, I = wte.shape[0], user_emb.shape[0], item_emb.shape[0]
    ids = input_ids.astype(jnp.int32)
    vm = (ids < V).astype(jnp.int32)
    um = ((ids >= V) & (ids < V + U)).astype(jnp.int32)
    im = (ids >= V + U).astype(jnp.int32)
    vocab_ids = jnp.clip(ids * vm, 0, V - 1)
    user_ids = jnp.clip((ids - V) * um, 0, U - 1)
    item_ids = jnp.clip((ids - V - U) * im, 0, I - 1)
    ve = wte[vocab_ids] * vm[..., None]
    ue = user_emb[user_ids] * um[..., None]
    ie = item_emb[item_ids] * im[..., None]
    return ve + ue + ie


if __name__ == "__main__":
    # small config consistent with the module's __init__
    batch, seq = 2, 8
    vocab_size, num_users, num_items = 32, 16, 16
    n_embd = 128
    initializer_range = 0.02

    key = jax.random.PRNGKey(0)
    k_wte, k_user, k_item, k_ids = jax.random.split(key, 4)

    wte = initializer_range * jax.random.normal(
        k_wte, (vocab_size, n_embd), dtype=jnp.float32)
    user_emb = initializer_range * jax.random.normal(
        k_user, (num_users, n_embd), dtype=jnp.float32)
    item_emb = initializer_range * jax.random.normal(
        k_item, (num_items, n_embd), dtype=jnp.float32)

    # ids span vocab / user / item ranges: [0, vocab_size + num_users + num_items)
    total = vocab_size + num_users + num_items
    input_ids = jax.random.randint(
        k_ids, (batch, seq), 0, total, dtype=jnp.int32)
    # force boundary ids into the batch to exercise all three tables
    boundary = jnp.array(
        [0, vocab_size - 1, vocab_size, vocab_size + num_users - 1,
         vocab_size + num_users, total - 1], dtype=jnp.int32)
    input_ids = input_ids.at[0, :boundary.shape[0]].set(boundary)

    out = gpt4rec_forward(input_ids, wte, user_emb, item_emb)
    out = jax.block_until_ready(out)

    ref = _reference_embed(input_ids, wte, user_emb, item_emb)
    assert out.shape == (batch, seq, n_embd)
    assert jnp.allclose(out, ref, atol=1e-6), "mismatch vs reference"

    print("KERNEL_OK")
</pallas_src>

<mosaic_0001>
module attributes {stable_mosaic.version = 11 : i64} {
  func.func @kernel(%arg0: i32, %arg1: memref<128xi32, #tpu.memory_space<smem>>, %arg2: memref<64x128xf32, #tpu.memory_space<any>>, %arg3: memref<128x128xf32, #tpu.memory_space<vmem>>, %arg4: memref<16x!tpu.dma_semaphore, #tpu.memory_space<semaphore_mem>>) attributes {dimension_semantics = [#tpu.dimension_semantics<parallel>], iteration_bounds = array<i64: 1>, scalar_prefetch = 1 : i64, scratch_operands = 1 : i64, tpu.core_type = #tpu.core_type<tc>, window_params = [{}, {transform_indices = @transform_1, window_bounds = array<i64: 128, 128>}]} {
    %c128_i32 = arith.constant 128 : i32
    %0 = arith.muli %arg0, %c128_i32 : i32
    %c0_i32 = arith.constant 0 : i32
    %c128_i32_0 = arith.constant 128 : i32
    %1 = arith.addi %c0_i32, %c128_i32_0 : i32
    %c1_i32 = arith.constant 1 : i32
    scf.for %arg5 = %c0_i32 to %1 step %c1_i32  : i32 {
      %c16_i32_4 = arith.constant 16 : i32
      %3 = arith.cmpi sge, %arg5, %c16_i32_4 : i32
      %4 = arith.extui %3 : i1 to i32
      %c0_i32_5 = arith.constant 0 : i32
      %5 = arith.cmpi ne, %4, %c0_i32_5 : i32
      scf.if %5 {
        %c16_i32_14 = arith.constant 16 : i32
        %23 = arith.subi %arg5, %c16_i32_14 : i32
        %24 = arith.addi %0, %23 : i32
        %25 = arith.index_cast %24 : i32 to index
        %26 = memref.load %arg1[%25] : memref<128xi32, #tpu.memory_space<smem>>
        %c16_i32_15 = arith.constant 16 : i32
        %c0_i32_16 = arith.constant 0 : i32
        %27 = arith.cmpi eq, %c16_i32_15, %c0_i32_16 : i32
        %c1_i32_17 = arith.constant 1 : i32
        %28 = arith.select %27, %c1_i32_17, %c16_i32_15 : i32
        %29 = arith.remsi %23, %28 : i32
        %c0_i32_18 = arith.constant 0 : i32
        %30 = arith.cmpi ne, %29, %c0_i32_18 : i32
        %c0_i32_19 = arith.constant 0 : i32
        %31 = arith.cmpi slt, %29, %c0_i32_19 : i32
        %c0_i32_20 = arith.constant 0 : i32
        %32 = arith.cmpi slt, %28, %c0_i32_20 : i32
        %33 = arith.xori %31, %32 : i1
        %34 = arith.andi %33, %30 : i1
        %35 = arith.addi %29, %28 : i32
        %36 = arith.select %34, %35, %29 : i32
        %c0_i32_21 = arith.constant 0 : i32
        %37 = tpu.memref_slice %arg2[%26, %c0_i32_21] : memref<64x128xf32, #tpu.memory_space<any>> -> memref<1x128xf32, #tpu.memory_space<any>>
        %c0_i32_22 = arith.constant 0 : i32
        %38 = tpu.memref_slice %arg3[%23, %c0_i32_22] : memref<128x128xf32, #tpu.memory_space<vmem>> -> memref<1x128xf32, #tpu.memory_space<vmem>>
        %39 = tpu.memref_slice %arg4[%36] : memref<16x!tpu.dma_semaphore, #tpu.memory_space<semaphore_mem>> -> memref<1x!tpu.dma_semaphore, #tpu.memory_space<semaphore_mem>>
        %40 = tpu.memref_squeeze %39 : memref<1x!tpu.dma_semaphore, #tpu.memory_space<semaphore_mem>> -> memref<!tpu.dma_semaphore, #tpu.memory_space<semaphore_mem>>
        tpu.wait_dma2 semaphore(%40 : memref<!tpu.dma_semaphore, #tpu.memory_space<semaphore_mem>>) src(%37 : memref<1x128xf32, #tpu.memory_space<any>>) dst(%38 : memref<1x128xf32, #tpu.memory_space<vmem>>)
      } else {
      }
      %6 = arith.addi %0, %arg5 : i32
      %7 = arith.index_cast %6 : i32 to index
      %8 = memref.load %arg1[%7] : memref<128xi32, #tpu.memory_space<smem>>
      %c16_i32_6 = arith.constant 16 : i32
      %c0_i32_7 = arith.constant 0 : i32
      %9 = arith.cmpi eq, %c16_i32_6, %c0_i32_7 : i32
      %c1_i32_8 = arith.constant 1 : i32
      %10 = arith.select %9, %c1_i32_8, %c16_i32_6 : i32
      %11 = arith.remsi %arg5, %10 : i32
      %c0_i32_9 = arith.constant 0 : i32
      %12 = arith.cmpi ne, %11, %c0_i32_9 : i32
      %c0_i32_10 = arith.constant 0 : i32
      %13 = arith.cmpi slt, %11, %c0_i32_10 : i32
      %c0_i32_11 = arith.constant 0 : i32
      %14 = arith.cmpi slt, %10, %c0_i32_11 : i32
      %15 = arith.xori %13, %14 : i1
      %16 = arith.andi %15, %12 : i1
      %17 = arith.addi %11, %10 : i32
      %18 = arith.select %16, %17, %11 : i32
      %c0_i32_12 = arith.constant 0 : i32
      %19 = tpu.memref_slice %arg2[%8, %c0_i32_12] : memref<64x128xf32, #tpu.memory_space<any>> -> memref<1x128xf32, #tpu.memory_space<any>>
      %c0_i32_13 = arith.constant 0 : i32
      %20 = tpu.memref_slice %arg3[%arg5, %c0_i32_13] : memref<128x128xf32, #tpu.memory_space<vmem>> -> memref<1x128xf32, #tpu.memory_space<vmem>>
      %21 = tpu.memref_slice %arg4[%18] : memref<16x!tpu.dma_semaphore, #tpu.memory_space<semaphore_mem>> -> memref<1x!tpu.dma_semaphore, #tpu.memory_space<semaphore_mem>>
      %22 = tpu.memref_squeeze %21 : memref<1x!tpu.dma_semaphore, #tpu.memory_space<semaphore_mem>> -> memref<!tpu.dma_semaphore, #tpu.memory_space<semaphore_mem>>
      tpu.enqueue_dma source(%19 : memref<1x128xf32, #tpu.memory_space<any>>) target(%20 : memref<1x128xf32, #tpu.memory_space<vmem>>) target_semaphore(%22 : memref<!tpu.dma_semaphore, #tpu.memory_space<semaphore_mem>>)
    }
    %c128_i32_1 = arith.constant 128 : i32
    %c112_i32 = arith.constant 112 : i32
    %c16_i32 = arith.constant 16 : i32
    %2 = arith.addi %c112_i32, %c16_i32 : i32
    %c1_i32_2 = arith.constant 1 : i32
    scf.for %arg5 = %c112_i32 to %2 step %c1_i32_2  : i32 {
      %3 = arith.addi %0, %arg5 : i32
      %4 = arith.index_cast %3 : i32 to index
      %5 = memref.load %arg1[%4] : memref<128xi32, #tpu.memory_space<smem>>
      %c16_i32_4 = arith.constant 16 : i32
      %c0_i32_5 = arith.constant 0 : i32
      %6 = arith.cmpi eq, %c16_i32_4, %c0_i32_5 : i32
      %c1_i32_6 = arith.constant 1 : i32
      %7 = arith.select %6, %c1_i32_6, %c16_i32_4 : i32
      %8 = arith.remsi %arg5, %7 : i32
      %c0_i32_7 = arith.constant 0 : i32
      %9 = arith.cmpi ne, %8, %c0_i32_7 : i32
      %c0_i32_8 = arith.constant 0 : i32
      %10 = arith.cmpi slt, %8, %c0_i32_8 : i32
      %c0_i32_9 = arith.constant 0 : i32
      %11 = arith.cmpi slt, %7, %c0_i32_9 : i32
      %12 = arith.xori %10, %11 : i1
      %13 = arith.andi %12, %9 : i1
      %14 = arith.addi %8, %7 : i32
      %15 = arith.select %13, %14, %8 : i32
      %c0_i32_10 = arith.constant 0 : i32
      %16 = tpu.memref_slice %arg2[%5, %c0_i32_10] : memref<64x128xf32, #tpu.memory_space<any>> -> memref<1x128xf32, #tpu.memory_space<any>>
      %c0_i32_11 = arith.constant 0 : i32
      %17 = tpu.memref_slice %arg3[%arg5, %c0_i32_11] : memref<128x128xf32, #tpu.memory_space<vmem>> -> memref<1x128xf32, #tpu.memory_space<vmem>>
      %18 = tpu.memref_slice %arg4[%15] : memref<16x!tpu.dma_semaphore, #tpu.memory_space<semaphore_mem>> -> memref<1x!tpu.dma_semaphore, #tpu.memory_space<semaphore_mem>>
      %19 = tpu.memref_squeeze %18 : memref<1x!tpu.dma_semaphore, #tpu.memory_space<semaphore_mem>> -> memref<!tpu.dma_semaphore, #tpu.memory_space<semaphore_mem>>
      tpu.wait_dma2 semaphore(%19 : memref<!tpu.dma_semaphore, #tpu.memory_space<semaphore_mem>>) src(%16 : memref<1x128xf32, #tpu.memory_space<any>>) dst(%17 : memref<1x128xf32, #tpu.memory_space<vmem>>)
    }
    %c16_i32_3 = arith.constant 16 : i32
    return
  }
  func.func @transform_1(%arg0: i32, %arg1: memref<128xi32, #tpu.memory_space<smem>>) -> (i32, i32) {
    %c0_i32 = arith.constant 0 : i32
    %c0_i32_0 = arith.constant 0 : i32
    return %arg0, %c0_i32 : i32, i32
  }
}

</mosaic_0001>

<bundles_post_ra>
// kernel: tpu_custom_call.1
= control target key start
LH: loop header
LB: loop body
LE: loop exit
PB: predicated region body
PF: predicated region fallthrough
CT: control target
= control target key end

     0   :  { %s365_s9 = smov [#allocation4]   ;;  %s428_s0 = inlined_call_operand.hbm [shape: s32[128], index: 0, kind: input, shape index: {}]   ;;  %s429_s1 = inlined_call_operand.hbm [shape: f32[64,128], index: 1, kind: input, shape index: {}]   ;;  %s430_s2 = inlined_call_operand.hbm [shape: f32[128,128], index: 2, kind: output, shape index: {}]  }
   0x1   :  { %8 = dma.hbm_to_smem %s428_s0, 16, %s365_s9, [#allocation3] }
   0x2   :  { %347 = dma.done.wait [#allocation3], 16 }
   0x3   :  { %348 = vsyncadd [#allocation3], 4294967280 }
   0x4   :  { %10 = sfence }
   0x5   :  { %11 = vsyncpa [#allocation6], 0  ;;  %s387_s12 = smov 0  }
   0x6 LB: > { %p268_p0 = scmp.ge.s32.totalorder %s359_s12, 16  ;;  %s239_s13 = sadd.s32 4294967280, %s359_s12  ;;  %s359_s12 = sphi %s387_s12, %s18_s12  }
   0x7   : > { %p26_p1 = scmp.lt.s32.totalorder %s239_s13, 0  ;;  %s27_s14 = ssub.s32 0, %s239_s13 }
   0x8   : > { %s240_s15 = smin.u32 %s239_s13, %s27_s14 }
   0x9   : > { %s29_s16 = sand.u32 15, %s240_s15  }
   0xa   : > { %s30_s0 = ssub.s32 0, %s29_s16 }
   0xb   : > { %s432_s0 = smov (!%p26_p1, %s30_s0), %s29_s16 }
   0xc   : > { %p242_p2 = scmp.lt.s32.totalorder %s432_s0, 0  ;;  %s36_s17 = sadd.s32 16, %s432_s0 }
   0xe   : > { %s434_s17 = smov (!%p242_p2, %s36_s17), %s432_s0 }
   0xf   : > { %s38_s18 = scalar_lea.sflag [#allocation2], %s434_s17 }
  0x10   : > { %350 = dma.done.wait (%p268_p0), %s38_s18, 16 }
  0x11   : > { %352 = vsyncadd (%p268_p0), %s38_s18, 4294967280  ;;  %p44_p3 = scmp.lt.s32.totalorder %s359_s12, 0  ;;  %s45_s19 = ssub.s32 0, %s359_s12 }
  0x12   : > { %s43_s20 = sld [smem:[#allocation4 + %s359_s12]]  ;;  %s243_s21 = smin.u32 %s359_s12, %s45_s19 }
  0x13   : > { %s47_s22 = sand.u32 15, %s243_s21   ;;  %s58_s24 = scalar_lea.vmem [#allocation5], %s359_s12 }
  0x14   : > { %s48_s23 = ssub.s32 0, %s47_s22  ;;  %s67_s25 = sshll.u32 %s58_s24, 4  ;;  %s68_s25 = int_to_ptr.vmem [resolvable:$true] %s67_s25 }
  0x15   : > { %s436_s23 = smov (!%p44_p3, %s48_s23), %s47_s22  ;;  %s299_s7 = scalar_lea.hbm %s429_s1, 1024 }
  0x16   : > { %p245_p4 = scmp.lt.s32.totalorder %s436_s23, 0  ;;  %s54_s26 = sadd.s32 16, %s436_s23 }
  0x18   : > { %s246_s27 = sshll.u32 %s43_s20, 4  ;;  %s438_s26 = smov (!%p245_p4, %s54_s26), %s436_s23 }
  0x19   : > { %s57_s30 = scalar_lea.hbm %s429_s1, %s246_s27  ;;  %s59_s3 = scalar_lea.sflag [#allocation2], %s438_s26 }
  0x1a   : > { %s297_s4 = scalar_lea.hbm %s57_s30, 16  ;;  %p300_p6 = scmp.lt.s32.totalorder %s57_s30, %s429_s1 }
  0x1b   : > { %p298_p5 = scmp.ne.s32.totalorder %s57_s30, %s297_s4  ;;  %p301_p7 = scmp.lt.s32.totalorder %s299_s7, %s297_s4 }
  0x1d   : > { %p302_p8 = por %p301_p7, %p300_p6 }
  0x1f   : > { %p303_p9 = pnand %p302_p8, %p298_p5 }
  0x21   : > { %306 = shalt.err (!%p303_p9)  }
  0x22   : > { %s307_s10 = scalar_lea.vmem %s68_s25, 16  ;;  %s366_s11 = smov [#allocation5]  }
  0x23   : > { %p308_p10 = scmp.ne.s32.totalorder %s68_s25, %s307_s10  ;;  %s309_s13 = sshll.u32 %s366_s11, 4  ;;  %s408_s13 = int_to_ptr.vmem [resolvable:$false] %s309_s13 }
  0x24   : > { %s411_s14 = scalar_lea.vmem %s408_s13, 2048  ;;  %p312_p11 = scmp.lt.s32.totalorder %s68_s25, %s408_s13 }
  0x25   : > { %p313_p12 = scmp.lt.s32.totalorder %s411_s14, %s307_s10 }
  0x27   : > { %p314_p13 = por %p313_p12, %p312_p11 }
  0x29   : > { %p315_p0 = pnand %p314_p13, %p308_p10 }
  0x2b   : > { %318 = shalt.err (!%p315_p0)  }
  0x2c   : > { %70 = dma.hbm_to_vmem [thread:$0]  %s57_s30, 16, %s68_s25, %s59_s3 }
  0x2d   : > { %s18_s12 = sadd.s32 1, %s359_s12  }
  0x2e   : > { %p15_p1 = scmp.ge.s32.totalorder %s18_s12, 128  }
  0x2f   :  { %s361_s15 = smov (%p15_p1), 112  }
  0x30   :  { %17 = sbr.rel (!%p15_p1) target bundleno = 6 (0x6), region = 62 }
  0x35 LB: > { %p79_p2 = scmp.lt.s32.totalorder %s363_s15, 0  ;;  %s80_s16 = ssub.s32 0, %s363_s15  ;;  %s363_s15 = sphi %s361_s15, %s76_s15  }
  0x36   : > { %s247_s0 = smin.u32 %s363_s15, %s80_s16 }
  0x37   : > { %s82_s17 = sand.u32 15, %s247_s0  }
  0x38   : > { %s83_s18 = ssub.s32 0, %s82_s17 }
  0x39   : > { %s440_s18 = smov (!%p79_p2, %s83_s18), %s82_s17 }
  0x3a   : > { %p249_p3 = scmp.lt.s32.totalorder %s440_s18, 0  ;;  %s89_s19 = sadd.s32 16, %s440_s18 }
  0x3c   : > { %s442_s19 = smov (!%p249_p3, %s89_s19), %s440_s18 }
  0x3d   : > { %s91_s20 = scalar_lea.sflag [#allocation2], %s442_s19 }
  0x3e   : > { %353 = dma.done.wait %s91_s20, 16 }
  0x3f   : > { %354 = vsyncadd %s91_s20, 4294967280  ;;  %s76_s15 = sadd.s32 1, %s363_s15  }
  0x40   : > { %p73_p4 = scmp.ge.s32.totalorder %s76_s15, 128  }
  0x41   :  { %p320_p5 = scmp.ne.s32.totalorder (%p73_p4), %s408_s13, %s411_s14  ;;  %p324_p6 = scmp.lt.s32.totalorder (%p73_p4), %s408_s13, %s408_s13 }
  0x42   :  { %75 = sbr.rel (!%p73_p4) target bundleno = 53 (0x35), region = 73  ;;  %p325_p7 = scmp.lt.s32.totalorder (%p73_p4), %s411_s14, %s411_s14 }
  0x44   :  { %p326_p8 = por (%p73_p4), %p325_p7, %p324_p6 }
  0x46   :  { %p327_p9 = pnand (%p73_p4), %p326_p8, %p320_p5 }
  0x48   :  { %330 = shalt.err (!%p327_p9)
}
  0x49   :  { %s367_s1 = smov 128   ;;  %s368_s12 = smov 8  }
  0x4a   :  { %106 = dma.vmem_to_hbm [thread:$0]  %s408_s13, 2048, %s430_s2, [#allocation6], %s367_s1, %s367_s1, %s368_s12  }
  0x4b   :  { %355 = dma.done.wait [#allocation6], 2048  }
  0x4c   :  { %356 = vsyncadd [#allocation6], 4294965248 }
  0x4d   :  { %110 = vsyncpa [#allocation6], 1 }
  0x4e   :  { %111 = vsyncmov [#allocation2] }
  0x51   :  { %s112_s23 = vpop.sfrf %111 }
  0x52   :  { %p250_p10 = scmp.ne.s32.totalorder %s112_s23, 0 }
  0x54   :  { %116 = shalt.err (%p250_p10)  }
  0x55   :  { %118 = vsyncmov [#allocation2 + $0x1] }
  0x58   :  { %s119_s24 = vpop.sfrf %118 }
  0x59   :  { %p251_p11 = scmp.ne.s32.totalorder %s119_s24, 0 }
  0x5b   :  { %123 = shalt.err (%p251_p11)  }
  0x5c   :  { %125 = vsyncmov [#allocation2 + $0x2] }
  0x5f   :  { %s126_s25 = vpop.sfrf %125 }
  0x60   :  { %p252_p12 = scmp.ne.s32.totalorder %s126_s25, 0 }
  0x62   :  { %130 = shalt.err (%p252_p12)  }
  0x63   :  { %132 = vsyncmov [#allocation2 + $0x3] }
  0x66   :  { %s133_s26 = vpop.sfrf %132 }
  0x67   :  { %p253_p13 = scmp.ne.s32.totalorder %s133_s26, 0 }
  0x69   :  { %137 = shalt.err (%p253_p13)  }
  0x6a   :  { %139 = vsyncmov [#allocation2 + $0x4] }
  0x6d   :  { %s140_s2 = vpop.sfrf %139 }
  0x6e   :  { %p254_p0 = scmp.ne.s32.totalorder %s140_s2, 0 }
  0x70   :  { %144 = shalt.err (%p254_p0)  }
  0x71   :  { %146 = vsyncmov [#allocation2 + $0x5] }
  0x74   :  { %s147_s27 = vpop.sfrf %146 }
  0x75   :  { %p255_p1 = scmp.ne.s32.totalorder %s147_s27, 0 }
  0x77   :  { %151 = shalt.err (%p255_p1)  }
  0x78   :  { %153 = vsyncmov [#allocation2 + $0x6] }
  0x7b   :  { %s154_s28 = vpop.sfrf %153 }
  0x7c   :  { %p256_p2 = scmp.ne.s32.totalorder %s154_s28, 0 }
  0x7e   :  { %158 = shalt.err (%p256_p2)  }
  0x7f   :  { %160 = vsyncmov [#allocation2 + $0x7] }
  0x82   :  { %s161_s29 = vpop.sfrf %160 }
  0x83   :  { %p257_p3 = scmp.ne.s32.totalorder %s161_s29, 0 }
  0x85   :  { %165 = shalt.err (%p257_p3)  }
  0x86   :  { %167 = vsyncmov [#allocation2 + $0x8] }
  0x89   :  { %s168_s30 = vpop.sfrf %167 }
  0x8a   :  { %p258_p4 = scmp.ne.s32.totalorder %s168_s30, 0 }
  0x8c   :  { %172 = shalt.err (%p258_p4)  }
  0x8d   :  { %174 = vsyncmov [#allocation2 + $0x9] }
  0x90   :  { %s175_s3 = vpop.sfrf %174 }
  0x91   :  { %p259_p5 = scmp.ne.s32.totalorder %s175_s3, 0 }
  0x93   :  { %179 = shalt.err (%p259_p5)  }
  0x94   :  { %181 = vsyncmov [#allocation2 + $0xa] }
  0x97   :  { %s182_s4 = vpop.sfrf %181 }
  0x98   :  { %p260_p6 = scmp.ne.s32.totalorder %s182_s4, 0 }
  0x9a   :  { %186 = shalt.err (%p260_p6)  }
  0x9b   :  { %188 = vsyncmov [#allocation2 + $0xb] }
  0x9e   :  { %s189_s5 = vpop.sfrf %188 }
  0x9f   :  { %p261_p7 = scmp.ne.s32.totalorder %s189_s5, 0 }
  0xa1   :  { %193 = shalt.err (%p261_p7)  }
  0xa2   :  { %195 = vsyncmov [#allocation2 + $0xc] }
  0xa5   :  { %s196_s6 = vpop.sfrf %195 }
  0xa6   :  { %p262_p8 = scmp.ne.s32.totalorder %s196_s6, 0 }
  0xa8   :  { %200 = shalt.err (%p262_p8)  }
  0xa9   :  { %202 = vsyncmov [#allocation2 + $0xd] }
  0xac   :  { %s203_s7 = vpop.sfrf %202 }
  0xad   :  { %p263_p9 = scmp.ne.s32.totalorder %s203_s7, 0 }
  0xaf   :  { %207 = shalt.err (%p263_p9)  }
  0xb0   :  { %209 = vsyncmov [#allocation2 + $0xe] }
  0xb3   :  { %s210_s8 = vpop.sfrf %209 }
  0xb4   :  { %p264_p10 = scmp.ne.s32.totalorder %s210_s8, 0 }
  0xb6   :  { %214 = shalt.err (%p264_p10)  }
  0xb7   :  { %216 = vsyncmov [#allocation2 + $0xf] }
  0xba   :  { %s217_s9 = vpop.sfrf %216 }
  0xbb   :  { %p265_p11 = scmp.ne.s32.totalorder %s217_s9, 0 }
  0xbd   :  { %221 = shalt.err (%p265_p11)  }

</bundles_post_ra>
